<compile_context>
chip_gen: v6e
topology: v6e:2x2x1
jax: 0.10.0
libtpu: 0.0.40
codegen_flags: <defaults>
</compile_context>

<pallas_src>
import math
from functools import partial

import numpy as np
import jax
import jax.numpy as jnp
from jax import lax
from jax.experimental import pallas as pl
from jax.experimental.pallas import tpu as pltpu  # noqa: F401  (no TPU-specific params needed at these shapes)

N_EMBD = 32
N_HEAD = 4
HEAD_DIM = N_EMBD // N_HEAD
LN_EPS = 1e-5
NEG_INF = -1e30  # finite "-inf": safe even if scores are ever cast narrower


def _mha_kernel(x_ref, params_ref, wqkv_ref, wp_ref, bias_ref, o_ref, *, n_rows):
    """Single invocation processes every (batch, time) row at once.

    x_ref      : (B*T, C)  f32   activations, row index = b*T + t
    params_ref : (3, C)    f32   rows = [ln_weight, ln_bias, proj_bias]
    wqkv_ref   : (C, 3C)   bf16  fused [Wq^T * scale | Wk^T | Wv^T]
    wp_ref     : (C, C)    bf16  output projection W^T
    bias_ref   : (H*B*T, H*B*T) f32  additive causal/block-diagonal mask
    o_ref      : (B*T, C)
    """
    C, H, HD = N_EMBD, N_HEAD, HEAD_DIM
    R = n_rows

    x = x_ref[...].astype(jnp.float32)                           # (R, C)
    prm = params_ref[...]                                        # (3, C)
    lnw, lnb, bp = prm[0:1, :], prm[1:2, :], prm[2:3, :]         # (1, C) each

    # ---- pre-LayerNorm over the embedding dim (f32) ----
    mean = jnp.mean(x, axis=-1, keepdims=True)
    var = jnp.mean((x - mean) ** 2, axis=-1, keepdims=True)
    xn = (x - mean) * lax.rsqrt(var + LN_EPS)
    xn = xn * lnw + lnb                                          # (R, C)

    # ---- fused Q/K/V projection: one (R,C)x(C,3C) MXU dispatch ----
    # Weights are already bf16 and the 1/sqrt(HD) scale is folded into Wq.
    qkv = jnp.dot(xn.astype(jnp.bfloat16), wqkv_ref[...],
                  preferred_element_type=jnp.float32)            # (R, 3C)
    q = qkv[:, :C]
    k = qkv[:, C:2 * C]
    v = qkv[:, 2 * C:]

    # ---- stack heads on the sublane axis: (H*R, HD), row = h*R + b*T + t ----
    qh = jnp.concatenate([q[:, h * HD:(h + 1) * HD] for h in range(H)], axis=0)
    kh = jnp.concatenate([k[:, h * HD:(h + 1) * HD] for h in range(H)], axis=0)
    vh = jnp.concatenate([v[:, h * HD:(h + 1) * HD] for h in range(H)], axis=0)

    # ---- all (head, batch) score blocks in ONE matmul ----
    s = lax.dot_general(qh.astype(jnp.bfloat16), kh.astype(jnp.bfloat16),
                        (((1,), (1,)), ((), ())),
                        preferred_element_type=jnp.float32)      # (H*R, H*R)
    s = s + bias_ref[...]        # host-precomputed causal/block-diag mask

    # ---- softmax with deferred normalization ----
    m = jnp.max(s, axis=-1, keepdims=True)
    p = jnp.exp(s - m)                                           # unnormalized, f32
    denom = jnp.sum(p, axis=-1, keepdims=True)                   # (H*R, 1)
    # TODO(synk): attention dropout (p=0.1) omitted — identity in eval mode.

    o = jnp.dot(p.astype(jnp.bfloat16), vh.astype(jnp.bfloat16),
                preferred_element_type=jnp.float32)              # (H*R, HD)
    o = o * pl.reciprocal(denom, approx=True)                    # EUP, not VALU

    # ---- reassemble heads back onto the lane axis: (R, C) ----
    attn = jnp.concatenate([o[h * R:(h + 1) * R, :] for h in range(H)], axis=1)

    # ---- output projection: one (R,C)x(C,C) matmul + bias ----
    out = jnp.dot(attn.astype(jnp.bfloat16), wp_ref[...],
                  preferred_element_type=jnp.float32)
    out = out + bp
    o_ref[...] = out.astype(o_ref.dtype)


def prepare_params(lnw, lnb, Wq, Wk, Wv, Wp, bp, *, batch, seq_len):
    """One-time host-side parameter prep (not on the per-call critical path).

    Wq/Wk/Wv/Wp are torch-layout (out_features, in_features); lnw/lnb/bp: (C,).
    """
    C, H = N_EMBD, N_HEAD
    scale = 1.0 / math.sqrt(HEAD_DIM)
    # Fused QKV weight with the score scale folded into the Wq columns, bf16.
    wqkv = jnp.concatenate([Wq.T * scale, Wk.T, Wv.T], axis=1).astype(jnp.bfloat16)
    wp = Wp.T.astype(jnp.bfloat16)
    # LN affine params + projection bias packed into a single (3, C) f32 input.
    params = jnp.stack([lnw, lnb, bp], axis=0).astype(jnp.float32)
    # Additive mask over the head-stacked (H*B*T, H*B*T) score matrix.
    # Row index = h*R + b*T + t  =>  blocks of exactly T rows encode (h, b).
    R = batch * seq_len
    n = H * R
    ri = np.arange(n)[:, None]
    ci = np.arange(n)[None, :]
    keep = (ri // seq_len == ci // seq_len) & (ci <= ri)
    bias = jnp.asarray(np.where(keep, 0.0, NEG_INF), dtype=np.float32)
    return params, wqkv, wp, bias


def mha_forward(x, params, wqkv, wp, bias):
    """x: (B, T, C); remaining args come from prepare_params."""
    B, T, C = x.shape
    R = B * T
    n = N_HEAD * R

    def full(shape):
        return pl.BlockSpec(shape, lambda: (0,) * len(shape))

    kernel = partial(_mha_kernel, n_rows=R)

    out = pl.pallas_call(
        kernel,
        out_shape=jax.ShapeDtypeStruct((R, C), x.dtype),
        in_specs=[
            full((R, C)),          # x: all B*T rows in one block
            full((3, C)),          # packed [ln_w; ln_b; proj_b]
            full((C, 3 * C)),      # fused Wqkv^T (bf16, scale folded)
            full((C, C)),          # Wp^T (bf16)
            full((n, n)),          # additive causal/block-diag mask
        ],
        out_specs=full((R, C)),
        # Single-block launch on all generations: at B*T=16 the per-grid-step
        # overhead exceeds the entire compute, so no grid / no pipelining.
    )(x.reshape(R, C), params, wqkv, wp, bias)

    return out.reshape(B, T, C)


def ref_forward(x, lnw, lnb, Wq, Wk, Wv, Wp, bp):
    """Pure-JAX f32 reference mirroring the PyTorch forward (eval mode)."""
    B, T, C = x.shape
    mean = x.mean(-1, keepdims=True)
    var = ((x - mean) ** 2).mean(-1, keepdims=True)
    xn = (x - mean) / jnp.sqrt(var + LN_EPS) * lnw + lnb
    q = (xn @ Wq.T).reshape(B, T, N_HEAD, HEAD_DIM).transpose(0, 2, 1, 3)
    k = (xn @ Wk.T).reshape(B, T, N_HEAD, HEAD_DIM).transpose(0, 2, 1, 3)
    v = (xn @ Wv.T).reshape(B, T, N_HEAD, HEAD_DIM).transpose(0, 2, 1, 3)
    s = jnp.einsum("bhqd,bhkd->bhqk", q, k) / math.sqrt(HEAD_DIM)
    mask = jnp.triu(jnp.ones((T, T), bool), 1)
    s = jnp.where(mask[None, None], -jnp.inf, s)
    p = jax.nn.softmax(s, axis=-1)
    o = jnp.einsum("bhqk,bhkd->bhqd", p, v).transpose(0, 2, 1, 3).reshape(B, T, C)
    return o @ Wp.T + bp


if __name__ == "__main__":
    B, T, C = 2, 8, N_EMBD
    key = jax.random.PRNGKey(0)
    kx, kq, kk, kv, kp, kb, kw, kbeta = jax.random.split(key, 8)

    x = jax.random.normal(kx, (B, T, C), jnp.float32)
    # torch-layout linear weights: (out_features, in_features)
    Wq = jax.random.normal(kq, (C, C), jnp.float32) * 0.1
    Wk = jax.random.normal(kk, (C, C), jnp.float32) * 0.1
    Wv = jax.random.normal(kv, (C, C), jnp.float32) * 0.1
    Wp = jax.random.normal(kp, (C, C), jnp.float32) * 0.1
    bp = jax.random.normal(kb, (C,), jnp.float32) * 0.1
    lnw = 1.0 + 0.1 * jax.random.normal(kw, (C,), jnp.float32)
    lnb = 0.1 * jax.random.normal(kbeta, (C,), jnp.float32)

    params, wqkv, wp_t, mask_bias = prepare_params(
        lnw, lnb, Wq, Wk, Wv, Wp, bp, batch=B, seq_len=T)

    out = mha_forward(x, params, wqkv, wp_t, mask_bias)
    out = jax.block_until_ready(out)

    ref = ref_forward(x, lnw, lnb, Wq, Wk, Wv, Wp, bp)
    assert out.shape == (B, T, C)
    # bf16 MXU operands (f32 accumulation) + approx EUP reciprocal -> loosened
    # tolerance vs the f32 reference.
    assert jnp.allclose(out, ref, atol=2e-2, rtol=2e-2), "mismatch vs reference"
    print("KERNEL_OK")
</pallas_src>

<mosaic_0001>
module attributes {stable_mosaic.version = 11 : i64} {
  func.func @_mha_kernel(%arg0: memref<16x32xf32, #tpu.memory_space<vmem>>, %arg1: memref<3x32xf32, #tpu.memory_space<vmem>>, %arg2: memref<32x96xbf16, #tpu.memory_space<vmem>>, %arg3: memref<32x32xbf16, #tpu.memory_space<vmem>>, %arg4: memref<64x64xf32, #tpu.memory_space<vmem>>, %arg5: memref<16x32xf32, #tpu.memory_space<vmem>>) attributes {dimension_semantics = [], scalar_prefetch = 0 : i64, scratch_operands = 0 : i64, tpu.core_type = #tpu.core_type<tc>} {
    %c0 = arith.constant 0 : index
    %c0_0 = arith.constant 0 : index
    %0 = vector.load %arg0[%c0, %c0_0] : memref<16x32xf32, #tpu.memory_space<vmem>>, vector<16x32xf32>
    %c0_1 = arith.constant 0 : index
    %c0_2 = arith.constant 0 : index
    %1 = vector.load %arg1[%c0_1, %c0_2] : memref<3x32xf32, #tpu.memory_space<vmem>>, vector<3x32xf32>
    %2 = vector.extract_strided_slice %1 {offsets = [0, 0], sizes = [1, 32], strides = [1, 1]} : vector<3x32xf32> to vector<1x32xf32>
    %3 = vector.extract_strided_slice %1 {offsets = [1, 0], sizes = [1, 32], strides = [1, 1]} : vector<3x32xf32> to vector<1x32xf32>
    %4 = vector.extract_strided_slice %1 {offsets = [2, 0], sizes = [1, 32], strides = [1, 1]} : vector<3x32xf32> to vector<1x32xf32>
    %cst = arith.constant dense<0.000000e+00> : vector<16xf32>
    %5 = vector.multi_reduction <add>, %0, %cst [1] : vector<16x32xf32> to vector<16xf32>
    %6 = vector.shape_cast %5 : vector<16xf32> to vector<16x1xf32>
    %cst_3 = arith.constant 3.200000e+01 : f32
    %7 = vector.broadcast %cst_3 : f32 to vector<16x1xf32>
    %8 = arith.divf %6, %7 : vector<16x1xf32>
    %9 = vector.broadcast %8 : vector<16x1xf32> to vector<16x32xf32>
    %10 = arith.subf %0, %9 : vector<16x32xf32>
    %11 = arith.mulf %10, %10 : vector<16x32xf32>
    %cst_4 = arith.constant dense<0.000000e+00> : vector<16xf32>
    %12 = vector.multi_reduction <add>, %11, %cst_4 [1] : vector<16x32xf32> to vector<16xf32>
    %13 = vector.shape_cast %12 : vector<16xf32> to vector<16x1xf32>
    %cst_5 = arith.constant 3.200000e+01 : f32
    %14 = vector.broadcast %cst_5 : f32 to vector<16x1xf32>
    %15 = arith.divf %13, %14 : vector<16x1xf32>
    %16 = vector.broadcast %8 : vector<16x1xf32> to vector<16x32xf32>
    %17 = arith.subf %0, %16 : vector<16x32xf32>
    %cst_6 = arith.constant 9.99999974E-6 : f32
    %18 = vector.broadcast %cst_6 : f32 to vector<16x1xf32>
    %19 = arith.addf %15, %18 : vector<16x1xf32>
    %20 = math.rsqrt %19 : vector<16x1xf32>
    %21 = vector.broadcast %20 : vector<16x1xf32> to vector<16x32xf32>
    %22 = arith.mulf %17, %21 : vector<16x32xf32>
    %23 = vector.broadcast %2 : vector<1x32xf32> to vector<16x32xf32>
    %24 = arith.mulf %22, %23 : vector<16x32xf32>
    %25 = vector.broadcast %3 : vector<1x32xf32> to vector<16x32xf32>
    %26 = arith.addf %24, %25 : vector<16x32xf32>
    %27 = arith.truncf %26 : vector<16x32xf32> to vector<16x32xbf16>
    %c0_7 = arith.constant 0 : index
    %c0_8 = arith.constant 0 : index
    %28 = vector.load %arg2[%c0_7, %c0_8] : memref<32x96xbf16, #tpu.memory_space<vmem>>, vector<32x96xbf16>
    %cst_9 = arith.constant dense<0.000000e+00> : vector<16x96xf32>
    %29 = tpu.matmul %27, %28, %cst_9 {dimension_numbers = #tpu.dot_dimension_numbers<[1], [0], [0], [1], [0, 0, 1, 1], [], []>} : vector<16x32xbf16>, vector<32x96xbf16>, vector<16x96xf32> -> vector<16x96xf32>
    %30 = vector.extract_strided_slice %29 {offsets = [0, 0], sizes = [16, 32], strides = [1, 1]} : vector<16x96xf32> to vector<16x32xf32>
    %31 = vector.extract_strided_slice %29 {offsets = [0, 32], sizes = [16, 32], strides = [1, 1]} : vector<16x96xf32> to vector<16x32xf32>
    %32 = vector.extract_strided_slice %29 {offsets = [0, 64], sizes = [16, 32], strides = [1, 1]} : vector<16x96xf32> to vector<16x32xf32>
    %33 = vector.extract_strided_slice %30 {offsets = [0, 0], sizes = [16, 8], strides = [1, 1]} : vector<16x32xf32> to vector<16x8xf32>
    %34 = vector.extract_strided_slice %30 {offsets = [0, 8], sizes = [16, 8], strides = [1, 1]} : vector<16x32xf32> to vector<16x8xf32>
    %35 = vector.extract_strided_slice %30 {offsets = [0, 16], sizes = [16, 8], strides = [1, 1]} : vector<16x32xf32> to vector<16x8xf32>
    %36 = vector.extract_strided_slice %30 {offsets = [0, 24], sizes = [16, 8], strides = [1, 1]} : vector<16x32xf32> to vector<16x8xf32>
    %37 = tpu.concatenate %33, %34, %35, %36 in 0 : vector<16x8xf32>, vector<16x8xf32>, vector<16x8xf32>, vector<16x8xf32> -> vector<64x8xf32>
    %38 = vector.extract_strided_slice %31 {offsets = [0, 0], sizes = [16, 8], strides = [1, 1]} : vector<16x32xf32> to vector<16x8xf32>
    %39 = vector.extract_strided_slice %31 {offsets = [0, 8], sizes = [16, 8], strides = [1, 1]} : vector<16x32xf32> to vector<16x8xf32>
    %40 = vector.extract_strided_slice %31 {offsets = [0, 16], sizes = [16, 8], strides = [1, 1]} : vector<16x32xf32> to vector<16x8xf32>
    %41 = vector.extract_strided_slice %31 {offsets = [0, 24], sizes = [16, 8], strides = [1, 1]} : vector<16x32xf32> to vector<16x8xf32>
    %42 = tpu.concatenate %38, %39, %40, %41 in 0 : vector<16x8xf32>, vector<16x8xf32>, vector<16x8xf32>, vector<16x8xf32> -> vector<64x8xf32>
    %43 = vector.extract_strided_slice %32 {offsets = [0, 0], sizes = [16, 8], strides = [1, 1]} : vector<16x32xf32> to vector<16x8xf32>
    %44 = vector.extract_strided_slice %32 {offsets = [0, 8], sizes = [16, 8], strides = [1, 1]} : vector<16x32xf32> to vector<16x8xf32>
    %45 = vector.extract_strided_slice %32 {offsets = [0, 16], sizes = [16, 8], strides = [1, 1]} : vector<16x32xf32> to vector<16x8xf32>
    %46 = vector.extract_strided_slice %32 {offsets = [0, 24], sizes = [16, 8], strides = [1, 1]} : vector<16x32xf32> to vector<16x8xf32>
    %47 = tpu.concatenate %43, %44, %45, %46 in 0 : vector<16x8xf32>, vector<16x8xf32>, vector<16x8xf32>, vector<16x8xf32> -> vector<64x8xf32>
    %48 = arith.truncf %37 : vector<64x8xf32> to vector<64x8xbf16>
    %49 = arith.truncf %42 : vector<64x8xf32> to vector<64x8xbf16>
    %cst_10 = arith.constant dense<0.000000e+00> : vector<64x64xf32>
    %50 = tpu.matmul %48, %49, %cst_10 {dimension_numbers = #tpu.dot_dimension_numbers<[1], [1], [0], [0], [0, 0, 1, 0], [], []>} : vector<64x8xbf16>, vector<64x8xbf16>, vector<64x64xf32> -> vector<64x64xf32>
    %c0_11 = arith.constant 0 : index
    %c0_12 = arith.constant 0 : index
    %51 = vector.load %arg4[%c0_11, %c0_12] : memref<64x64xf32, #tpu.memory_space<vmem>>, vector<64x64xf32>
    %52 = arith.addf %50, %51 : vector<64x64xf32>
    %cst_13 = arith.constant dense<0xFF800000> : vector<64xf32>
    %53 = vector.multi_reduction <maximumf>, %52, %cst_13 [1] : vector<64x64xf32> to vector<64xf32>
    %54 = vector.shape_cast %53 : vector<64xf32> to vector<64x1xf32>
    %55 = vector.broadcast %54 : vector<64x1xf32> to vector<64x64xf32>
    %56 = arith.subf %52, %55 : vector<64x64xf32>
    %57 = math.exp %56 : vector<64x64xf32>
    %cst_14 = arith.constant dense<0.000000e+00> : vector<64xf32>
    %58 = vector.multi_reduction <add>, %57, %cst_14 [1] : vector<64x64xf32> to vector<64xf32>
    %59 = vector.shape_cast %58 : vector<64xf32> to vector<64x1xf32>
    %60 = arith.truncf %57 : vector<64x64xf32> to vector<64x64xbf16>
    %61 = arith.truncf %47 : vector<64x8xf32> to vector<64x8xbf16>
    %cst_15 = arith.constant dense<0.000000e+00> : vector<64x8xf32>
    %62 = tpu.matmul %60, %61, %cst_15 {dimension_numbers = #tpu.dot_dimension_numbers<[1], [0], [0], [1], [0, 0, 1, 1], [], []>} : vector<64x64xbf16>, vector<64x8xbf16>, vector<64x8xf32> -> vector<64x8xf32>
    %63 = tpu.reciprocal %59 {approx = true} : vector<64x1xf32> -> vector<64x1xf32>
    %64 = vector.broadcast %63 : vector<64x1xf32> to vector<64x8xf32>
    %65 = arith.mulf %62, %64 : vector<64x8xf32>
    %66 = vector.extract_strided_slice %65 {offsets = [0, 0], sizes = [16, 8], strides = [1, 1]} : vector<64x8xf32> to vector<16x8xf32>
    %67 = vector.extract_strided_slice %65 {offsets = [16, 0], sizes = [16, 8], strides = [1, 1]} : vector<64x8xf32> to vector<16x8xf32>
    %68 = vector.extract_strided_slice %65 {offsets = [32, 0], sizes = [16, 8], strides = [1, 1]} : vector<64x8xf32> to vector<16x8xf32>
    %69 = vector.extract_strided_slice %65 {offsets = [48, 0], sizes = [16, 8], strides = [1, 1]} : vector<64x8xf32> to vector<16x8xf32>
    %70 = tpu.concatenate %66, %67, %68, %69 in 1 : vector<16x8xf32>, vector<16x8xf32>, vector<16x8xf32>, vector<16x8xf32> -> vector<16x32xf32>
    %71 = arith.truncf %70 : vector<16x32xf32> to vector<16x32xbf16>
    %c0_16 = arith.constant 0 : index
    %c0_17 = arith.constant 0 : index
    %72 = vector.load %arg3[%c0_16, %c0_17] : memref<32x32xbf16, #tpu.memory_space<vmem>>, vector<32x32xbf16>
    %cst_18 = arith.constant dense<0.000000e+00> : vector<16x32xf32>
    %73 = tpu.matmul %71, %72, %cst_18 {dimension_numbers = #tpu.dot_dimension_numbers<[1], [0], [0], [1], [0, 0, 1, 1], [], []>} : vector<16x32xbf16>, vector<32x32xbf16>, vector<16x32xf32> -> vector<16x32xf32>
    %74 = vector.broadcast %4 : vector<1x32xf32> to vector<16x32xf32>
    %75 = arith.addf %73, %74 : vector<16x32xf32>
    %c0_19 = arith.constant 0 : index
    %c0_20 = arith.constant 0 : index
    %76 = vector.load %arg5[%c0_19, %c0_20] : memref<16x32xf32, #tpu.memory_space<vmem>>, vector<16x32xf32>
    tpu.vector_store %arg5[%c0_19, %c0_20], %75 {strides = array<i32>} : memref<16x32xf32, #tpu.memory_space<vmem>>, vector<16x32xf32>,
    return
  }
}

</mosaic_0001>

<bundles_post_ra>
// kernel: tpu_custom_call.1
= control target key start
LH: loop header
LB: loop body
LE: loop exit
PB: predicated region body
PF: predicated region fallthrough
CT: control target
= control target key end

     0   :  { %10 = vsyncpa [#allocation3], 0  ;;  %s1089_s0 = inlined_call_operand.hbm [shape: f32[16,32], index: 0, kind: input, shape index: {}]   ;;  %s1090_s1 = inlined_call_operand.hbm [shape: f32[3,32], index: 1, kind: input, shape index: {}]   ;;  %s1091_s2 = inlined_call_operand.hbm [shape: bf16[32,96], index: 2, kind: input, shape index: {}]   ;;  %s1092_s3 = inlined_call_operand.hbm [shape: bf16[32,32], index: 3, kind: input, shape index: {}]   ;;  %s1093_s4 = inlined_call_operand.hbm [shape: f32[64,64], index: 4, kind: input, shape index: {}]   ;;  %s1094_s5 = inlined_call_operand.hbm [shape: f32[16,32], index: 5, kind: output, shape index: {}]  }
   0x1   :  { %11 = vsyncpa [#allocation6], 0 }
   0x2   :  { %12 = vsyncpa [#allocation9], 0 }
   0x3   :  { %13 = vsyncpa [#allocation4], 0  ;;  %s930_s18 = smov [#allocation5]  }
   0x4   :  { %s32_s19 = sshll.u32 %s930_s18, 4  ;;  %s33_s19 = int_to_ptr.vmem [resolvable:$true] %s32_s19 }
   0x5   :  { %s810_s20 = scalar_lea.vmem %s33_s19, 64  ;;  %p815_p1 = scmp.lt.s32.totalorder %s33_s19, %s33_s19 }
   0x6   :  { %p811_p0 = scmp.ne.s32.totalorder %s33_s19, %s810_s20  ;;  %p816_p2 = scmp.lt.s32.totalorder %s810_s20, %s810_s20 }
   0x8   :  { %p817_p3 = por %p816_p2, %p815_p1 }
   0xa   :  { %p818_p4 = pnand %p817_p3, %p811_p0 }
   0xc   :  { %821 = shalt.err (!%p818_p4)
}
   0xd   :  { %35 = dma.hbm_to_vmem [thread:$0]  %s1090_s1, 64, %s33_s19, [#allocation6]  }
   0xe   :  { %s931_s23 = smov [#allocation8]   ;;  %s932_s25 = smov [#allocation2]  }
   0xf   :  { %s53_s24 = sshll.u32 %s931_s23, 4  ;;  %s19_s26 = sshll.u32 %s932_s25, 4  ;;  %s54_s24 = int_to_ptr.vmem [resolvable:$true] %s53_s24  ;;  %s20_s26 = int_to_ptr.vmem [resolvable:$true] %s19_s26 }
  0x10   :  { %s830_s27 = scalar_lea.vmem %s54_s24, 256  ;;  %p835_p6 = scmp.lt.s32.totalorder %s54_s24, %s54_s24 }
  0x11   :  { %p831_p5 = scmp.ne.s32.totalorder %s54_s24, %s830_s27  ;;  %p836_p7 = scmp.lt.s32.totalorder %s830_s27, %s830_s27 }
  0x13   :  { %p837_p8 = por %p836_p7, %p835_p6 }
  0x15   :  { %p838_p9 = pnand %p837_p8, %p831_p5 }
  0x17   :  { %841 = shalt.err (!%p838_p9)
}
  0x18   :  { %s933_s28 = smov 64   ;;  %s934_s29 = smov 4  }
  0x19   :  { %59 = dma.hbm_to_vmem [thread:$0]  %s1092_s3, 256, %s54_s24, [#allocation9], %s933_s28, %s933_s28, %s934_s29  }
  0x1a   :  { %s850_s1 = scalar_lea.vmem %s20_s26, 256  ;;  %p855_p11 = scmp.lt.s32.totalorder %s20_s26, %s20_s26 }
  0x1b   :  { %p851_p10 = scmp.ne.s32.totalorder %s20_s26, %s850_s1  ;;  %p856_p12 = scmp.lt.s32.totalorder %s850_s1, %s850_s1 }
  0x1d   :  { %p857_p13 = por %p856_p12, %p855_p11 }
  0x1f   :  { %p858_p0 = pnand %p857_p13, %p851_p10 }
  0x21   :  { %861 = shalt.err (!%p858_p0)
}
  0x22   :  { %s935_s7 = smov 128   ;;  %s936_s8 = smov 8  }
  0x23   :  { %25 = dma.hbm_to_vmem [thread:$0]  %s1089_s0, 256, %s20_s26, [#allocation3], %s935_s7, %s935_s7, %s936_s8  }
  0x24   :  { %s937_s11 = smov [#allocation7]   ;;  %s938_s3 = smov [#allocation10]  }
  0x25   :  { %s41_s12 = sshll.u32 %s937_s11, 4  ;;  %s65_s13 = sshll.u32 %s938_s3, 4  ;;  %s42_s12 = int_to_ptr.vmem [resolvable:$true] %s41_s12  ;;  %s66_s13 = int_to_ptr.vmem [resolvable:$true] %s65_s13 }
  0x26   :  { %s870_s14 = scalar_lea.vmem %s42_s12, 256  ;;  %p875_p2 = scmp.lt.s32.totalorder %s42_s12, %s42_s12 }
  0x27   :  { %p871_p1 = scmp.ne.s32.totalorder %s42_s12, %s870_s14  ;;  %p876_p3 = scmp.lt.s32.totalorder %s870_s14, %s870_s14 }
  0x29   :  { %p877_p4 = por %p876_p3, %p875_p2 }
  0x2b   :  { %p878_p5 = pnand %p877_p4, %p871_p1 }
  0x2d   :  { %881 = shalt.err (!%p878_p5)
}
  0x2e   :  { %47 = dma.hbm_to_vmem [thread:$0]  %s1091_s2, 256, %s42_s12, [#allocation6], %s933_s28, %s933_s28, %s934_s29  }
  0x2f   :  { %s890_s0 = scalar_lea.vmem %s66_s13, 1024  ;;  %p895_p7 = scmp.lt.s32.totalorder %s66_s13, %s66_s13 }
  0x30   :  { %p891_p6 = scmp.ne.s32.totalorder %s66_s13, %s890_s0  ;;  %p896_p8 = scmp.lt.s32.totalorder %s890_s0, %s890_s0 }
  0x32   :  { %p897_p9 = por %p896_p8, %p895_p7 }
  0x34   :  { %p898_p10 = pnand %p897_p9, %p891_p6 }
  0x36   :  { %901 = shalt.err (!%p898_p10)
}
  0x37   :  { %71 = dma.hbm_to_vmem [thread:$0]  %s1093_s4, 1024, %s66_s13, [#allocation9], %s935_s7, %s935_s7, %s936_s8  }
  0x38   :  { %922 = dma.done.wait [#allocation3], 256  }
  0x39   :  { %923 = vsyncadd [#allocation3], 4294967040 }
  0x3a   :  { %924 = dma.done.wait [#allocation6], 320  }
  0x3b   :  { %925 = vsyncadd [#allocation6], 4294966976 }
  0x3c   :  { %926 = dma.done.wait [#allocation9], 1280  }
  0x3d   :  { %927 = vsyncadd [#allocation9], 4294966016  ;;  %vm91_vm0 = vcmask 261120   ;;  %v88_v0 = vld [vmem:[#allocation2] sm:$0xff]  ;;  %v89_v1 = vld [vmem:[#allocation2 + $0x8] sm:$0xff]  ;;  %v939_v15 = vmov 0.0   ;;  %v119_v23 = vlaneseq }
  0x3e   :  { %v92_v2 = vsel %vm91_vm0, %v88_v0, 0.0  ;;  %v95_v3 = vsel %vm91_vm0, %v89_v1, 0.0  ;;  %v762_v14 = vld [vmem:[#allocation7 + $0x8] sm:$0xff]   ;;  %662 = vmatprep.subr.bf16.mxu0 %v939_v15  ;;  %vm940_vm1 = vmmov 0   ;;  %v763_v16 = vld [vmem:[#allocation7] sm:$0xff]   ;;  %vm236_vm2 = vcmask 64512  }
  0x3f   :  { %93 = vadd.xlane.f32.xlu0 %v92_v2  ;;  %666 = vmatprep.mubr.msk.bf16.mxu0 %vm940_vm1, %v939_v15  ;;  %v1011_v24 = vshrl.u32 %v119_v23, 7  ;;  %v1014_v26 = vld [vmem:[#allocation5] sm:$0x7]  ;;  %s941_s2 = smov 112   ;;  %s942_s4 = smov 104   ;;  %v218_v2 = vld [vmem:[#allocation10 + $0x10] sm:$0xff] }
  0x40   :  { %663 = vmatpush3.bf16.msra.mxu0 %v762_v14  ;;  %s943_s19 = smov 120   ;;  %s944_s20 = smov 96   ;;  %vm326_vm3 = vcmask 523264   ;;  %v223_v23 = vld [vmem:[#allocation10 + $0x38] sm:$0xff]  ;;  %vm534_vm4 = vcmask 130048   ;;  %vm537_vm5 = vcmask 195584  }
  0x41   :  { %664 = vmatprep.subr.bf16.mxu0 %v939_v15  ;;  %v121_v25 = vsub.s32 0, %v1011_v24  ;;  %v127_v30 = vsub.s32 1, %v1011_v24  ;;  %s945_s21 = smov 24   ;;  %s946_s22 = smov 16  }
  0x42   :  { %s947_s23 = smov [#allocation11]  }
  0x43   :  { %96 = vadd.xlane.f32.xlu0 %v95_v3  ;;  %v122_v29 = vrot.slane %v1014_v26, %v121_v25  ;;  %v128_v34 = vrot.slane %v1014_v26, %v127_v30  ;;  %v221_v30 = vld [vmem:[#allocation10 + $0x28] sm:$0xff]  ;;  %s612_s24 = sshll.u32 %s947_s23, 4  ;;  %s613_s24 = int_to_ptr.vmem [resolvable:$true] %s612_s24 }
  0x44   :  { %665 = vmatpush3.bf16.msra.mxu0 %v763_v16  ;;  %v222_v16 = vld [vmem:[#allocation10 + $0x30] sm:$0xff]  ;;  %s902_s25 = scalar_lea.vmem %s613_s24, 256  ;;  %p907_p12 = scmp.lt.s32.totalorder %s613_s24, %s613_s24 }
  0x45   :  { %p903_p11 = scmp.ne.s32.totalorder %s613_s24, %s902_s25  ;;  %p908_p13 = scmp.lt.s32.totalorder %s902_s25, %s902_s25 }
  0x47   :  { %p909_p0 = por %p908_p13, %p907_p12 }
  0x49   :  { %p910_p1 = pnand %p909_p0, %p903_p11 }
  0xc8   :  { %v94_v4 = vpop.xlane.xlu0 %93 }
  0xc9   :  { %v99_v5 = vmul.f32 0.03125, %v94_v4  ;;  %v216_v4 = vld [vmem:[#allocation10] sm:$0xff] }
  0xcb   :  { %v101_v6 = vsub.f32 %v88_v0, %v99_v5 }
  0xcc   :  { %v97_v7 = vpop.xlane.xlu0 %96 }
  0xcd   :  { %v100_v8 = vmul.f32 0.03125, %v97_v7  ;;  %v103_v9 = vmul.f32 %v101_v6, %v101_v6  ;;  %v219_v7 = vld [vmem:[#allocation10 + $0x18] sm:$0xff] }
  0xcf   :  { %v102_v10 = vsub.f32 %v89_v1, %v100_v8  ;;  %v105_v11 = vsel %vm91_vm0, %v103_v9, 0.0 }
  0xd0   :  { %106 = vadd.xlane.f32.xlu1 %v105_v11  ;;  %v217_v11 = vld [vmem:[#allocation10 + $0x8] sm:$0xff] }
  0xd1   :  { %v104_v12 = vmul.f32 %v102_v10, %v102_v10 }
  0xd3   :  { %v108_v13 = vsel %vm91_vm0, %v104_v12, 0.0 }
  0xd4   :  { %109 = vadd.xlane.f32.xlu1 %v108_v13 }
 0x159   :  { %v107_v17 = vpop.xlane.xlu1 %106 }
 0x15a   :  { %v111_v18 = vmul.f32 0.03125, %v107_v17 }
 0x15c   :  { %v113_v19 = vadd.f32 1e-05, %v111_v18 }
 0x15d   :  { %v110_v20 = vpop.xlane.xlu1 %109 }
 0x15e   :  { %766 = vrsqrt.f32 %v113_v19  ;;  %v112_v21 = vmul.f32 0.03125, %v110_v20  ;;  %v220_v20 = vld [vmem:[#allocation10 + $0x20] sm:$0xff] }
 0x160   :  { %v114_v22 = vadd.f32 1e-05, %v112_v21 }
 0x162   :  { %768 = vrsqrt.f32 %v114_v22 }
 0x16b   :  { %v767_v27 = vpop.eup %766 }
 0x16c   :  { %v117_v28 = vmul.f32 %v767_v27, %v101_v6 }
 0x16e   :  { %v123_v33 = vmul.f32 %v122_v29, %v117_v28 }
 0x16f   :  { %v769_v31 = vpop.eup %768 }
 0x170   :  { %v118_v32 = vmul.f32 %v769_v31, %v102_v10  ;;  %v129_v36 = vadd.f32 %v128_v34, %v123_v33 }
 0x172   :  { %v124_v35 = vmul.f32 %v122_v29, %v118_v32 }
 0x174   :  { %v130_v37 = vadd.f32 %v128_v34, %v124_v35 }
 0x176   :  { %v131_v38 = vpack.c.bf16 %v130_v37, %v129_v36 }
 0x178   :  { %667 = vmatmul.mubr.msk.bf16.vlgmr.msra.gmra.mxu0 %vm91_vm0, %v131_v38 }
 0x238   :  { %v185_v39 = vpop.f32.mrf.mxu0 }
 0x23a   :  { %v668_v40 = vpop.f32.mrf.mxu0 }
 0x23c   :  { %v188_v41 = vpop.f32.mrf.mxu0 }
 0x23d   :  { %v737_v42 = vpack.i.bf16 %v188_v41, %v185_v39  ;;  %v1020_v43 = vpack.c.bf16 %v188_v41, %v185_v39 }
 0x23e   :  { %v669_v44 = vpop.f32.mrf.mxu0 }
 0x23f   :  { %738 = vrot.lane.b32.xlu1 %v737_v42, %s941_s2  ;;  %733 = vrot.lane.b32.xlu0 %v737_v42, %s942_s4 }
 0x240   :  { %678 = vmatprep.mubr.msk.bf16.mxu1 %vm236_vm2, %v1020_v43 }
 0x243   :  { %743 = vrot.lane.b32.xlu1 %v737_v42, %s943_s19 }
 0x2b1   :  { %v739_v45 = vpop.permute.xlu1 %738  ;;  %v734_v46 = vpop.permute.xlu0 %733 }
 0x2b2   :  { %v741_v47 = vunpack.i.h.bf16 %v739_v45  ;;  %v740_v48 = vunpack.i.l.bf16 %v739_v45  ;;  %v736_v49 = vunpack.i.h.bf16 %v734_v46  ;;  %v735_v50 = vunpack.i.l.bf16 %v734_v46 }
 0x2b4   :  { %v1024_v51 = vpack.c.bf16 %v741_v47, %v740_v48  ;;  %v215_v52 = vpack.c.bf16 %v736_v49, %v735_v50 }
 0x2b5   :  { %v744_v53 = vpop.permute.xlu1 %743 }
 0x2b6   :  { %v746_v54 = vunpack.i.h.bf16 %v744_v53  ;;  %v745_v55 = vunpack.i.l.bf16 %v744_v53  ;;  %232 = vrot.lane.b32.xlu0 %v1024_v51, %s944_s20  ;;  %234 = vrot.lane.b32.xlu1 %v215_v52, %s944_s20 }
 0x2b8   :  { %v1027_v56 = vpack.c.bf16 %v746_v54, %v745_v55 }
 0x2ba   :  { %230 = vrot.lane.b32.xlu1 %v1027_v56, %s944_s20  ;;  %228 = vrot.lane.b32.xlu0 %v1020_v43, %s944_s20 }
 0x2be   :  { %409 = vrot.lane.b32.xlu1 %v215_v52, %s933_s28 }
 0x328   :  { %v235_v57 = vpop.permute.xlu1 %234  ;;  %v233_v59 = vpop.permute.xlu0 %232 }
 0x329   :  { %710 = vmatprep.subr.msk.bf16.mxu1 %vm236_vm2, %v235_v57  ;;  %v259_v58 = vsel %vm236_vm2, %v235_v57, 0  ;;  %v256_v62 = vsel %vm236_vm2, %v233_v59, 0 }
 0x32a   :  { %671 = vmatpush3.bf16.xpose.msra.mxu1 %v259_v58 }
 0x32b   :  { %711 = vmatprep.subr.msk.bf16.mxu1 %vm236_vm2, %v233_v59 }
 0x32c   :  { %v231_v60 = vpop.permute.xlu1 %230  ;;  %v229_v0 = vpop.permute.xlu0 %228 }
 0x32d   :  { %v253_v63 = vsel %vm236_vm2, %v231_v60, 0  ;;  %v250_v1 = vsel %vm236_vm2, %v229_v0, 0 }
 0x330   :  { %v410_v61 = vpop.permute.xlu1 %409 }
 0x331   :  { %686 = vmatprep.subr.bf16.mxu0 %v410_v61 }
 0x332   :  { %673 = vmatpush3.bf16.xpose.msra.mxu1 %v256_v62  ;;  %687 = vmatpush3.bf16.msra.mxu0 %v410_v61 }
 0x333   :  { %712 = vmatprep.subr.msk.bf16.mxu1 %vm236_vm2, %v231_v60 }
 0x33a   :  { %675 = vmatpush3.bf16.xpose.msra.mxu1 %v253_v63 }
 0x33b   :  { %713 = vmatprep.subr.msk.bf16.mxu1 %vm236_vm2, %v229_v0 }
 0x342   :  { %677 = vmatpush3.bf16.xpose.msra.mxu1 %v250_v1 }
 0x349   :  { %679 = vmatmul.mubr.msk.bf16.vlgmr.msra.gmra.mxu1 %vm236_vm2, %v1027_v56 }
 0x34a   :  { %682 = vmatprep.mubr.msk.bf16.mxu1 %vm236_vm2, %v1024_v51 }
 0x351   :  { %683 = vmatmul.mubr.msk.bf16.gmra.mxu1 %vm236_vm2, %v215_v52 }
 0x409   :  { %v680_v3 = vpop.f32.mrf.mxu1 }
 0x40a   :  { %v304_v5 = vadd.f32 %v680_v3, %v218_v2 }
 0x40b   :  { %v295_v6 = vpop.f32.mrf.mxu1 }
 0x40c   :  { %v296_v8 = vadd.f32 %v295_v6, %v216_v4  ;;  %v333_v9 = vsel %vm326_vm3, %v304_v5, -inf }
 0x40d   :  { %334 = vmax.xlane.f32.xlu0 %v333_v9  ;;  %v681_v10 = vpop.f32.mrf.mxu1 }
 0x40e   :  { %v307_v12 = vadd.f32 %v681_v10, %v219_v7  ;;  %v327_v13 = vsel %vm326_vm3, %v296_v8, -inf }
 0x40f   :  { %v298_v14 = vpop.f32.mrf.mxu1  ;;  %328 = vmax.xlane.f32.xlu1 %v327_v13 }
 0x410   :  { %v299_v17 = vadd.f32 %v298_v14, %v217_v11  ;;  %v336_v18 = vsel %vm326_vm3, %v307_v12, -inf }
 0x411   :  { %337 = vmax.xlane.f32.xlu0 %v336_v18  ;;  %v684_v19 = vpop.f32.mrf.mxu1 }
 0x412   :  { %v320_v21 = vadd.f32 %v684_v19, %v222_v16  ;;  %v330_v27 = vsel %vm326_vm3, %v299_v17, -inf }
 0x413   :  { %v311_v22 = vpop.f32.mrf.mxu1 }
 0x414   :  { %v312_v25 = vadd.f32 %v311_v22, %v220_v20  ;;  %v345_v28 = vsel %vm326_vm3, %v320_v21, -inf }
 0x415   :  { %v685_v29 = vpop.f32.mrf.mxu1  ;;  %331 = vmax.xlane.f32.xlu0 %v330_v27  ;;  %346 = vmax.xlane.f32.xlu1 %v345_v28 }
 0x416   :  { %v323_v31 = vadd.f32 %v685_v29, %v223_v23  ;;  %v339_v35 = vsel %vm326_vm3, %v312_v25, -inf  ;;  %v764_v29 = vld [vmem:[#allocation8 + $0x8] sm:$0xff]  }
 0x417   :  { %v314_v32 = vpop.f32.mrf.mxu1 }
 0x418   :  { %v315_v33 = vadd.f32 %v314_v32, %v221_v30  ;;  %v348_v34 = vsel %vm326_vm3, %v323_v31, -inf }
 0x419   :  { %349 = vmax.xlane.f32.xlu0 %v348_v34  ;;  %340 = vmax.xlane.f32.xlu1 %v339_v35  ;;  %v765_v35 = vld [vmem:[#allocation8] sm:$0xff]  }
 0x41a   :  { %v342_v36 = vsel %vm326_vm3, %v315_v33, -inf }
 0x41d   :  { %343 = vmax.xlane.f32.xlu0 %v342_v36 }
 0x42a   :  { %405 = vrot.lane.b32.xlu1 %v1027_v56, %s933_s28 }
 0x42e   :  { %403 = vrot.lane.b32.xlu1 %v1020_v43, %s933_s28 }
 0x433   :  { %407 = vrot.lane.b32.xlu0 %v1024_v51, %s933_s28 }
 0x496   :  { %v335_v37 = vpop.xlane.xlu0 %334 }
 0x497   :  { %v353_v38 = vsub.f32 %v304_v5, %v335_v37 }
 0x498   :  { %v329_v39 = vpop.xlane.xlu1 %328 }
 0x499   :  { %v363_v40 = vmul.f32 1.442695, %v353_v38  ;;  %v351_v41 = vsub.f32 %v296_v8, %v329_v39 }
 0x49a   :  { %v338_v42 = vpop.xlane.xlu0 %337 }
 0x49b   :  { %770 = vpow2.f32 %v363_v40  ;;  %v354_v44 = vsub.f32 %v307_v12, %v338_v42  ;;  %v359_v46 = vmul.f32 1.442695, %v351_v41 }
 0x49d   :  { %v365_v45 = vmul.f32 1.442695, %v354_v44 }
 0x49e   :  { %v332_v47 = vpop.xlane.xlu0 %331  ;;  %v347_v48 = vpop.xlane.xlu1 %346 }
 0x49f   :  { %772 = vpow2.f32 %v365_v45  ;;  %v352_v49 = vsub.f32 %v299_v17, %v332_v47  ;;  %v357_v50 = vsub.f32 %v320_v21, %v347_v48 }
 0x4a0   :  { %774 = vpow2.f32 %v359_v46 }
 0x4a1   :  { %v361_v52 = vmul.f32 1.442695, %v352_v49  ;;  %v371_v43 = vmul.f32 1.442695, %v357_v50 }
 0x4a2   :  { %v350_v53 = vpop.xlane.xlu0 %349  ;;  %v341_v51 = vpop.xlane.xlu1 %340 }
 0x4a3   :  { %776 = vpow2.f32 %v361_v52  ;;  %v355_v54 = vsub.f32 %v312_v25, %v341_v51  ;;  %v358_v56 = vsub.f32 %v323_v31, %v350_v53 }
 0x4a4   :  { %778 = vpow2.f32 %v371_v43 }
 0x4a5   :  { %v367_v55 = vmul.f32 1.442695, %v355_v54  ;;  %v373_v62 = vmul.f32 1.442695, %v358_v56 }
 0x4a6   :  { %v344_v57 = vpop.xlane.xlu0 %343  ;;  %v406_v63 = vpop.permute.xlu1 %405 }
 0x4a7   :  { %v356_v58 = vsub.f32 %v315_v33, %v344_v57  ;;  %780 = vpow2.f32 %v367_v55 }
 0x4a8   :  { %v771_v59 = vpop.eup %770 }
 0x4a9   :  { %v369_v60 = vmul.f32 1.442695, %v356_v58  ;;  %v381_v61 = vsel %vm326_vm3, %v771_v59, 0.0 }
 0x4aa   :  { %v408_v0 = vpop.permute.xlu0 %407  ;;  %382 = vadd.xlane.f32.xlu1 %v381_v61  ;;  %v404_v5 = vpop.permute.xlu1 %403 }
 0x4ab   :  { %782 = vpow2.f32 %v369_v60  ;;  %688 = vmatprep.subr.bf16.mxu0 %v408_v0 }
 0x4ac   :  { %v773_v1 = vpop.eup %772  ;;  %689 = vmatpush3.bf16.msra.mxu0 %v408_v0  ;;  %784 = vpow2.f32 %v373_v62 }
 0x4ad   :  { %690 = vmatprep.subr.bf16.mxu0 %v406_v63  ;;  %v384_v2 = vsel %vm326_vm3, %v773_v1, 0.0  ;;  %v775_v3 = vpop.eup %774  ;;  %v400_v12 = vpack.c.bf16 %v773_v1, %v771_v59 }
 0x4ae   :  { %385 = vadd.xlane.f32.xlu0 %v384_v2  ;;  %v375_v10 = vsel %vm326_vm3, %v775_v3, 0.0 }
 0x4b0   :  { %v777_v4 = vpop.eup %776  ;;  %691 = vmatpush3.bf16.msra.mxu0 %v406_v63 }
 0x4b1   :  { %v779_v6 = vpop.eup %778  ;;  %692 = vmatprep.subr.bf16.mxu0 %v404_v5  ;;  %v399_v7 = vpack.c.bf16 %v777_v4, %v775_v3  ;;  %v378_v20 = vsel %vm326_vm3, %v777_v4, 0.0 }
 0x4b2   :  { %v393_v8 = vsel %vm326_vm3, %v779_v6, 0.0 }
 0x4b3   :  { %394 = vadd.xlane.f32.xlu1 %v393_v8  ;;  %694 = vmatprep.mubr.msk.bf16.mxu0 %vm326_vm3, %v399_v7 }
 0x4b4   :  { %693 = vmatpush3.bf16.msra.mxu0 %v404_v5  ;;  %v781_v9 = vpop.eup %780 }
 0x4b5   :  { %702 = vmatprep.subr.bf16.mxu0 %v939_v15  ;;  %v387_v11 = vsel %vm326_vm3, %v781_v9, 0.0 }
 0x4b6   :  { %388 = vadd.xlane.f32.xlu0 %v387_v11  ;;  %v547_v11 = vsub.s32 2, %v1011_v24 }
 0x4b7   :  { %376 = vadd.xlane.f32.xlu1 %v375_v10  ;;  %695 = vmatmul.mubr.msk.bf16.vlgmr.msra.gmra.mxu0 %vm326_vm3, %v400_v12 }
 0x4b8   :  { %v783_v13 = vpop.eup %782  ;;  %703 = vmatpush3.bf16.msra.mxu0 %v764_v29  ;;  %v548_v12 = vrot.slane %v1014_v26, %v547_v11 }
 0x4b9   :  { %v390_v14 = vsel %vm326_vm3, %v783_v13, 0.0  ;;  %v401_v16 = vpack.c.bf16 %v783_v13, %v781_v9  ;;  %v785_v17 = vpop.eup %784  ;;  %704 = vmatprep.subr.bf16.mxu0 %v939_v15 }
 0x4ba   :  { %391 = vadd.xlane.f32.xlu0 %v390_v14  ;;  %v396_v18 = vsel %vm326_vm3, %v785_v17, 0.0  ;;  %v402_v19 = vpack.c.bf16 %v785_v17, %v779_v6 }
 0x4bb   :  { %698 = vmatprep.mubr.msk.bf16.mxu0 %vm326_vm3, %v401_v16 }
 0x4bc   :  { %705 = vmatpush3.bf16.msra.mxu0 %v765_v35 }
 0x4be   :  { %397 = vadd.xlane.f32.xlu0 %v396_v18 }
 0x4bf   :  { %699 = vmatmul.mubr.msk.bf16.gmra.mxu0 %vm326_vm3, %v402_v19 }
 0x4c0   :  { %706 = vmatprep.mubr.msk.bf16.mxu0 %vm940_vm1, %v939_v15 }
 0x4c2   :  { %379 = vadd.xlane.f32.xlu0 %v378_v20 }
 0x533   :  { %v383_v23 = vpop.xlane.xlu1 %382 }
 0x534   :  { %786 = vrcp.f32 %v383_v23 }
 0x537   :  { %v386_v21 = vpop.xlane.xlu0 %385 }
 0x538   :  { %788 = vrcp.f32 %v386_v21 }
 0x53c   :  { %v395_v27 = vpop.xlane.xlu1 %394 }
 0x53d   :  { %790 = vrcp.f32 %v395_v27 }
 0x53f   :  { %v389_v22 = vpop.xlane.xlu0 %388 }
 0x540   :  { %v377_v51 = vpop.xlane.xlu1 %376 }
 0x541   :  { %v787_v32 = vpop.eup %786 }
 0x543   :  { %v392_v25 = vpop.xlane.xlu0 %391 }
 0x545   :  { %v789_v33 = vpop.eup %788 }
 0x547   :  { %v398_v28 = vpop.xlane.xlu0 %397 }
 0x548   :  { %792 = vrcp.f32 %v398_v28 }
 0x549   :  { %794 = vrcp.f32 %v389_v22 }
 0x54a   :  { %796 = vrcp.f32 %v392_v25  ;;  %v791_v42 = vpop.eup %790 }
 0x54b   :  { %v380_v54 = vpop.xlane.xlu0 %379  ;;  %798 = vrcp.f32 %v377_v51 }
 0x54c   :  { %800 = vrcp.f32 %v380_v54 }
 0x555   :  { %v793_v44 = vpop.eup %792 }
 0x556   :  { %v795_v46 = vpop.eup %794 }
 0x557   :  { %v797_v48 = vpop.eup %796 }
 0x558   :  { %v799_v56 = vpop.eup %798 }
 0x559   :  { %v801_v59 = vpop.eup %800 }
 0x577   :  { %v696_v30 = vpop.f32.mrf.mxu0 }
 0x578   :  { %v502_v36 = vmul.f32 %v787_v32, %v696_v30 }
 0x579   :  { %v461_v31 = vpop.f32.mrf.mxu0 }
 0x57a   :  { %v500_v61 = vmul.f32 %v799_v56, %v461_v31 }
 0x57b   :  { %v697_v34 = vpop.f32.mrf.mxu0 }
 0x57c   :  { %v503_v37 = vmul.f32 %v789_v33, %v697_v34 }
 0x57d   :  { %v464_v38 = vpop.f32.mrf.mxu0 }
 0x57e   :  { %v747_v39 = vpack.i.bf16 %v503_v37, %v502_v36  ;;  %v501_v62 = vmul.f32 %v801_v59, %v464_v38 }
 0x57f   :  { %v700_v40 = vpop.f32.mrf.mxu0 }
 0x580   :  { %748 = vrot.lane.b32.xlu1 %v747_v39, %s936_s8  ;;  %v506_v47 = vmul.f32 %v791_v42, %v700_v40 }
 0x581   :  { %v477_v41 = vpop.f32.mrf.mxu0 }
 0x582   :  { %v504_v50 = vmul.f32 %v795_v46, %v477_v41 }
 0x583   :  { %v701_v45 = vpop.f32.mrf.mxu0 }
 0x584   :  { %v507_v15 = vmul.f32 %v793_v44, %v701_v45 }
 0x585   :  { %v480_v49 = vpop.f32.mrf.mxu0 }
 0x586   :  { %v757_v52 = vpack.i.bf16 %v507_v15, %v506_v47  ;;  %v505_v43 = vmul.f32 %v797_v48, %v480_v49 }
 0x588   :  { %v752_v53 = vpack.i.bf16 %v505_v43, %v504_v50  ;;  %758 = vrot.lane.b32.xlu1 %v757_v52, %s945_s21 }
 0x58a   :  { %753 = vrot.lane.b32.xlu0 %v752_v53, %s946_s22 }
 0x5f2   :  { %v749_v55 = vpop.permute.xlu1 %748 }
 0x5f3   :  { %v751_v57 = vunpack.i.h.bf16 %v749_v55  ;;  %v750_v58 = vunpack.i.l.bf16 %v749_v55 }
 0x5f5   :  { %v532_v2 = vsel %vm236_vm2, %v500_v61, %v750_v58  ;;  %v533_v3 = vsel %vm236_vm2, %v501_v62, %v751_v57 }
 0x5fa   :  { %v759_v60 = vpop.permute.xlu1 %758 }
 0x5fb   :  { %v761_v4 = vunpack.i.h.bf16 %v759_v60  ;;  %v760_v5 = vunpack.i.l.bf16 %v759_v60 }
 0x5fc   :  { %v754_v63 = vpop.permute.xlu0 %753 }
 0x5fd   :  { %v756_v0 = vunpack.i.h.bf16 %v754_v63  ;;  %v755_v1 = vunpack.i.l.bf16 %v754_v63 }
 0x5ff   :  { %v536_v6 = vsel %vm534_vm4, %v533_v3, %v756_v0  ;;  %v535_v7 = vsel %vm534_vm4, %v532_v2, %v755_v1 }
 0x600   :  { %v539_v8 = vsel %vm537_vm5, %v536_v6, %v761_v4  ;;  %v538_v9 = vsel %vm537_vm5, %v535_v7, %v760_v5 }
 0x601   :  { %v540_v10 = vpack.c.bf16 %v539_v8, %v538_v9 }
 0x603   :  { %707 = vmatmul.mubr.msk.bf16.vlgmr.msra.gmra.mxu0 %vm91_vm0, %v540_v10 }
 0x6c3   :  { %v598_v13 = vpop.f32.mrf.mxu0 }
 0x6c4   :  { %v599_v14 = vadd.f32 %v598_v13, %v548_v12 }
 0x6c5   :  { %v708_v16 = vpop.f32.mrf.mxu0 }
 0x6c6   :  { %605 = vst.msk [vmem:[#allocation11] sm:$0xff] %vm91_vm0, %v599_v14 }
 0x6c7   :  { %v601_v17 = vpop.f32.mrf.mxu0 }
 0x6c8   :  { %v602_v18 = vadd.f32 %v601_v17, %v548_v12 }
 0x6c9   :  { %v709_v19 = vpop.f32.mrf.mxu0 }
 0x6ca   :  { %606 = vst.msk [vmem:[#allocation11 + $0x8] sm:$0xff] %vm91_vm0, %v602_v18 }
 0x6cb   :  { %913 = shalt.err (!%p910_p1)
}
 0x6cc   :  { %618 = dma.vmem_to_hbm [thread:$0]  %s613_s24, 256, %s1094_s5, [#allocation4], %s935_s7, %s935_s7, %s936_s8  }
 0x6cd   :  { %928 = dma.done.wait [#allocation4], 256  }
 0x6ce   :  { %929 = vsyncadd [#allocation4], 4294967040 }
 0x6cf   :  { %622 = vsyncpa [#allocation3], 1 }
 0x6d0   :  { %623 = vsyncpa [#allocation6], 1 }
 0x6d1   :  { %624 = vsyncpa [#allocation9], 1 }
 0x6d2   :  { %625 = vsyncpa [#allocation4], 1 }

</bundles_post_ra>
